<compile_context>
chip_gen: v6e
topology: v6e:2x2x1
jax: 0.10.0
libtpu: 0.0.40
codegen_flags: <defaults>
</compile_context>

<pallas_src>
import functools

import jax
import jax.numpy as jnp
from jax import lax
from jax.experimental import pallas as pl
from jax.experimental.pallas import tpu as pltpu


_UNROLL = 4  # bounded unroll of the in-chunk timestep loop


def _vmem_budget_bytes():
    """Scoped-VMEM budget with headroom, derived from the chip (v7x has 64 MiB physical
    per TC vs 128 MiB on v5e/v6e; v5e's *default* scoped limit is only 16 MiB)."""
    try:
        cap = int(pltpu.get_tpu_info().vmem_capacity_bytes)
    except Exception:  # no TPU info available -> conservative (v7x per-TC physical)
        cap = 64 << 20
    return cap // 2  # leave headroom for double-buffering bookkeeping etc.


_VMEM_BUDGET = _vmem_budget_bytes()


def _pick_t_chunk(T, B, H, gx_itemsize, budget_bytes):
    """Largest divisor of T whose double-buffered gates_x chunk uses at most ~half the
    scoped-VMEM budget (rest is W_hh^T, h/c scratch, output)."""
    per_step = B * 4 * H * gx_itemsize
    max_steps = max(1, (budget_bytes // 2) // (2 * per_step))
    best = 1
    for d in range(1, T + 1):
        if T % d == 0 and d <= max_steps:
            best = d
    return best


def _lstm_recurrence_kernel(gx_ref, whh_ref, hn_ref, h_scr, c_scr):
    """One time-chunk of the LSTM recurrence.

    gx_ref : [T_CHUNK, B, 4H] bf16  precomputed x@W_ih^T + (b_ih+b_hh), time-major.
    whh_ref: [H, 4H]          bf16  W_hh^T (constant block index -> resident in VMEM).
    hn_ref : [B, H]           f32   final hidden state (written on last chunk).
    h_scr, c_scr: [B, H]      f32   VMEM scratch carrying the state across chunks.
    """
    t_chunk, _, _ = gx_ref.shape
    H = whh_ref.shape[0]

    @pl.when(pl.program_id(0) == 0)
    def _():
        h_scr[...] = jnp.zeros_like(h_scr)
        c_scr[...] = jnp.zeros_like(c_scr)

    def step(t, carry):
        h, c = carry
        # Only the recurrent matmul stays inside the loop; bf16 operands, f32 accum.
        # TODO(synk): if MXU-push-bound at large H, switch to weight-stationary MXU
        #             driving (pltpu.matmul_push_rhs once, matmul_acc_lhs per step).
        gates = gx_ref[t].astype(jnp.float32) + jnp.dot(
            h.astype(jnp.bfloat16), whh_ref[...],
            preferred_element_type=jnp.float32)
        # TODO(synk): at production sizes, pad H to a multiple of 128 (and batch/pack so
        #             B >= 8/16) so these gate slices are whole lane-tiles and the MXU
        #             rows aren't mostly padding.
        i_g = jax.nn.sigmoid(gates[:, 0 * H:1 * H])
        f_g = jax.nn.sigmoid(gates[:, 1 * H:2 * H])
        g_g = jnp.tanh(gates[:, 2 * H:3 * H])
        o_g = jax.nn.sigmoid(gates[:, 3 * H:4 * H])
        c_new = f_g * c + i_g * g_g
        h_new = o_g * jnp.tanh(c_new)
        return h_new, c_new

    h, c = lax.fori_loop(0, t_chunk, step, (h_scr[...], c_scr[...]),
                         unroll=_UNROLL)
    h_scr[...] = h
    c_scr[...] = c

    @pl.when(pl.program_id(0) == pl.num_programs(0) - 1)
    def _():
        hn_ref[...] = h_scr[...]


@functools.partial(jax.jit, static_argnames=("t_chunk",))
def vanilla_lstm_forward(x, w_ih, w_hh, b_ih, b_hh, w_dense, b_dense, *,
                         t_chunk=None):
    """x: [B, T, I] (batch_first, like PyTorch). Returns [B] (reshape(-1) of [B,1])."""
    B, T, I = x.shape
    H = w_hh.shape[1]
    assert w_ih.shape == (4 * H, I)
    assert w_hh.shape == (4 * H, H)

    x = x.astype(jnp.float32)
    bias = (b_ih + b_hh).astype(jnp.float32)                     # [4H] fused bias

    # Hoisted input projection: one matmul over the whole sequence, emitted directly in
    # time-major [T, B, 4H] and cast to bf16 (halves the HBM stream into the kernel).
    # TODO(synk): for long T, fuse this projection into the kernel per time-chunk
    #             (stream x chunks + resident W_ih^T) to avoid the HBM round-trip of
    #             the [T, B, 4H] intermediate.
    gates_x = (jnp.einsum("bti,gi->tbg", x, w_ih.astype(jnp.float32),
                          preferred_element_type=jnp.float32)
               + bias).astype(jnp.bfloat16)                      # [T, B, 4H] bf16
    whh_t = jnp.transpose(w_hh).astype(jnp.bfloat16)             # [H, 4H]  bf16

    if t_chunk is None:
        t_chunk = _pick_t_chunk(T, B, H, gates_x.dtype.itemsize, _VMEM_BUDGET)
    assert T % t_chunk == 0, "t_chunk must divide T"
    n_chunks = T // t_chunk

    # TODO(synk): on v7x (2 TCs), add a leading "parallel" batch-chunk grid axis once B
    #             is large enough to split; h/c scratch becomes per-core automatically.
    h_n = pl.pallas_call(
        _lstm_recurrence_kernel,
        out_shape=jax.ShapeDtypeStruct((B, H), jnp.float32),
        grid_spec=pltpu.PrefetchScalarGridSpec(
            num_scalar_prefetch=0,
            grid=(n_chunks,),
            in_specs=[
                # gates_x streamed chunk-by-chunk (auto double-buffered by BlockSpec).
                pl.BlockSpec((t_chunk, B, 4 * H), lambda t: (t, 0, 0)),
                # W_hh^T: constant block index -> DMA'd once, stays resident in VMEM.
                pl.BlockSpec((H, 4 * H), lambda t: (0, 0)),
            ],
            out_specs=pl.BlockSpec((B, H), lambda t: (0, 0)),
            scratch_shapes=[
                pltpu.VMEM((B, H), jnp.float32),   # h carry (persists across chunks)
                pltpu.VMEM((B, H), jnp.float32),   # c carry
            ],
        ),
        compiler_params=pltpu.CompilerParams(
            dimension_semantics=("arbitrary",),    # sequential dependence over time
            vmem_limit_bytes=_VMEM_BUDGET,
        ),
    )(gates_x, whh_t)

    # Dense head Linear(H, 1) on h_n in XLA (keeps the N=1 matmul and 1-lane masked
    # stores off the kernel path).
    out = h_n @ jnp.transpose(w_dense).astype(jnp.float32) + b_dense.astype(jnp.float32)
    return out.reshape(-1)   # matches torch: dense(h_n[0]).reshape(-1) -> [B]


def _reference_forward(x, w_ih, w_hh, b_ih, b_hh, w_dense, b_dense):
    """Pure-JAX f32 reference matching torch.nn.LSTM semantics."""
    B, T, I = x.shape
    H = w_hh.shape[1]
    h = jnp.zeros((B, H), jnp.float32)
    c = jnp.zeros((B, H), jnp.float32)
    for t in range(T):
        g = x[:, t, :] @ w_ih.T + b_ih + h @ w_hh.T + b_hh
        i_g = jax.nn.sigmoid(g[:, 0 * H:1 * H])
        f_g = jax.nn.sigmoid(g[:, 1 * H:2 * H])
        g_g = jnp.tanh(g[:, 2 * H:3 * H])
        o_g = jax.nn.sigmoid(g[:, 3 * H:4 * H])
        c = f_g * c + i_g * g_g
        h = o_g * jnp.tanh(c)
    return (h @ w_dense.T + b_dense).reshape(-1)


if __name__ == "__main__":
    # small shapes consistent with the module: batch=2, seq=8, input=4, hidden=32
    B, T, I, H = 2, 8, 4, 32

    key = jax.random.PRNGKey(0)
    ks = jax.random.split(key, 7)
    bound = 1.0 / jnp.sqrt(jnp.float32(H))   # PyTorch-style uniform init range

    x = jax.random.normal(ks[0], (B, T, I), jnp.float32)
    w_ih = jax.random.uniform(ks[1], (4 * H, I), jnp.float32, -bound, bound)
    w_hh = jax.random.uniform(ks[2], (4 * H, H), jnp.float32, -bound, bound)
    b_ih = jax.random.uniform(ks[3], (4 * H,), jnp.float32, -bound, bound)
    b_hh = jax.random.uniform(ks[4], (4 * H,), jnp.float32, -bound, bound)
    w_dense = jax.random.uniform(ks[5], (1, H), jnp.float32, -bound, bound)
    b_dense = jax.random.uniform(ks[6], (1,), jnp.float32, -bound, bound)

    # t_chunk=4 -> 2 time chunks: exercises streamed-chunk DMA + VMEM-scratch h/c carry.
    out = vanilla_lstm_forward(x, w_ih, w_hh, b_ih, b_hh, w_dense, b_dense, t_chunk=4)
    out = jax.block_until_ready(out)

    ref = _reference_forward(x, w_ih, w_hh, b_ih, b_hh, w_dense, b_dense)
    assert out.shape == (B,)
    # bf16 matmul operands (f32 accumulation, f32 h/c state) -> looser tolerance vs the
    # pure-f32 reference.
    assert jnp.allclose(out, ref, atol=1e-2, rtol=1e-2), (out, ref)

    print("KERNEL_OK")
</pallas_src>

<mosaic_0001>
module attributes {stable_mosaic.version = 11 : i64} {
  func.func @_lstm_recurrence_kernel(%arg0: i32, %arg1: memref<4x2x128xbf16, #tpu.memory_space<vmem>>, %arg2: memref<32x128xbf16, #tpu.memory_space<vmem>>, %arg3: memref<2x32xf32, #tpu.memory_space<vmem>>, %arg4: memref<2x32xf32, #tpu.memory_space<vmem>>, %arg5: memref<2x32xf32, #tpu.memory_space<vmem>>) attributes {dimension_semantics = [#tpu.dimension_semantics<arbitrary>], iteration_bounds = array<i64: 2>, scalar_prefetch = 0 : i64, scratch_operands = 2 : i64, tpu.core_type = #tpu.core_type<tc>, window_params = [{transform_indices = @transform_0, window_bounds = array<i64: 4, 2, 128>}, {pipeline_mode = #tpu.pipeline_mode<synchronous>, transform_indices = @transform_1, window_bounds = array<i64: 32, 128>}, {pipeline_mode = #tpu.pipeline_mode<synchronous>, transform_indices = @transform_2, window_bounds = array<i64: 2, 32>}]} {
    %c0_i32 = arith.constant 0 : i32
    %0 = arith.cmpi eq, %arg0, %c0_i32 : i32
    %1 = arith.extui %0 : i1 to i32
    %c0_i32_0 = arith.constant 0 : i32
    %2 = arith.cmpi ne, %1, %c0_i32_0 : i32
    scf.if %2 {
      %cst_42 = arith.constant 0.000000e+00 : f32
      %142 = vector.broadcast %cst_42 : f32 to vector<2x32xf32>
      %c0_43 = arith.constant 0 : index
      %c0_44 = arith.constant 0 : index
      %143 = vector.load %arg4[%c0_43, %c0_44] : memref<2x32xf32, #tpu.memory_space<vmem>>, vector<2x32xf32>
      tpu.vector_store %arg4[%c0_43, %c0_44], %142 {strides = array<i32>} : memref<2x32xf32, #tpu.memory_space<vmem>>, vector<2x32xf32>,
      %cst_45 = arith.constant 0.000000e+00 : f32
      %144 = vector.broadcast %cst_45 : f32 to vector<2x32xf32>
      %c0_46 = arith.constant 0 : index
      %c0_47 = arith.constant 0 : index
      %145 = vector.load %arg5[%c0_46, %c0_47] : memref<2x32xf32, #tpu.memory_space<vmem>>, vector<2x32xf32>
      tpu.vector_store %arg5[%c0_46, %c0_47], %144 {strides = array<i32>} : memref<2x32xf32, #tpu.memory_space<vmem>>, vector<2x32xf32>,
    } else {
    }
    %c0 = arith.constant 0 : index
    %c0_1 = arith.constant 0 : index
    %3 = vector.load %arg4[%c0, %c0_1] : memref<2x32xf32, #tpu.memory_space<vmem>>, vector<2x32xf32>
    %c0_2 = arith.constant 0 : index
    %c0_3 = arith.constant 0 : index
    %4 = vector.load %arg5[%c0_2, %c0_3] : memref<2x32xf32, #tpu.memory_space<vmem>>, vector<2x32xf32>
    %c0_i32_4 = arith.constant 0 : i32
    %5 = arith.index_cast %c0_i32_4 : i32 to index
    %c0_5 = arith.constant 0 : index
    %c0_6 = arith.constant 0 : index
    %6 = vector.load %arg1[%5, %c0_5, %c0_6] : memref<4x2x128xbf16, #tpu.memory_space<vmem>>, vector<1x2x128xbf16>
    %7 = vector.shape_cast %6 : vector<1x2x128xbf16> to vector<2x128xbf16>
    %8 = arith.extf %7 : vector<2x128xbf16> to vector<2x128xf32>
    %9 = arith.truncf %3 : vector<2x32xf32> to vector<2x32xbf16>
    %c0_7 = arith.constant 0 : index
    %c0_8 = arith.constant 0 : index
    %10 = vector.load %arg2[%c0_7, %c0_8] : memref<32x128xbf16, #tpu.memory_space<vmem>>, vector<32x128xbf16>
    %cst = arith.constant dense<0.000000e+00> : vector<2x128xf32>
    %11 = tpu.matmul %9, %10, %cst {dimension_numbers = #tpu.dot_dimension_numbers<[1], [0], [0], [1], [0, 0, 1, 1], [], []>} : vector<2x32xbf16>, vector<32x128xbf16>, vector<2x128xf32> -> vector<2x128xf32>
    %12 = arith.addf %8, %11 : vector<2x128xf32>
    %13 = vector.extract_strided_slice %12 {offsets = [0, 0], sizes = [2, 32], strides = [1, 1]} : vector<2x128xf32> to vector<2x32xf32>
    %14 = arith.negf %13 : vector<2x32xf32>
    %15 = math.exp %14 : vector<2x32xf32>
    %cst_9 = arith.constant 1.000000e+00 : f32
    %16 = vector.broadcast %cst_9 : f32 to vector<2x32xf32>
    %17 = arith.addf %16, %15 : vector<2x32xf32>
    %18 = arith.divf %16, %17 : vector<2x32xf32>
    %19 = vector.extract_strided_slice %12 {offsets = [0, 32], sizes = [2, 32], strides = [1, 1]} : vector<2x128xf32> to vector<2x32xf32>
    %20 = arith.negf %19 : vector<2x32xf32>
    %21 = math.exp %20 : vector<2x32xf32>
    %cst_10 = arith.constant 1.000000e+00 : f32
    %22 = vector.broadcast %cst_10 : f32 to vector<2x32xf32>
    %23 = arith.addf %22, %21 : vector<2x32xf32>
    %24 = arith.divf %22, %23 : vector<2x32xf32>
    %25 = vector.extract_strided_slice %12 {offsets = [0, 64], sizes = [2, 32], strides = [1, 1]} : vector<2x128xf32> to vector<2x32xf32>
    %26 = math.tanh %25 : vector<2x32xf32>
    %27 = vector.extract_strided_slice %12 {offsets = [0, 96], sizes = [2, 32], strides = [1, 1]} : vector<2x128xf32> to vector<2x32xf32>
    %28 = arith.negf %27 : vector<2x32xf32>
    %29 = math.exp %28 : vector<2x32xf32>
    %cst_11 = arith.constant 1.000000e+00 : f32
    %30 = vector.broadcast %cst_11 : f32 to vector<2x32xf32>
    %31 = arith.addf %30, %29 : vector<2x32xf32>
    %32 = arith.divf %30, %31 : vector<2x32xf32>
    %33 = arith.mulf %24, %4 : vector<2x32xf32>
    %34 = arith.mulf %18, %26 : vector<2x32xf32>
    %35 = arith.addf %33, %34 : vector<2x32xf32>
    %36 = math.tanh %35 : vector<2x32xf32>
    %37 = arith.mulf %32, %36 : vector<2x32xf32>
    %c1_i32 = arith.constant 1 : i32
    %38 = arith.index_cast %c1_i32 : i32 to index
    %c0_12 = arith.constant 0 : index
    %c0_13 = arith.constant 0 : index
    %39 = vector.load %arg1[%38, %c0_12, %c0_13] : memref<4x2x128xbf16, #tpu.memory_space<vmem>>, vector<1x2x128xbf16>
    %40 = vector.shape_cast %39 : vector<1x2x128xbf16> to vector<2x128xbf16>
    %41 = arith.extf %40 : vector<2x128xbf16> to vector<2x128xf32>
    %42 = arith.truncf %37 : vector<2x32xf32> to vector<2x32xbf16>
    %c0_14 = arith.constant 0 : index
    %c0_15 = arith.constant 0 : index
    %43 = vector.load %arg2[%c0_14, %c0_15] : memref<32x128xbf16, #tpu.memory_space<vmem>>, vector<32x128xbf16>
    %cst_16 = arith.constant dense<0.000000e+00> : vector<2x128xf32>
    %44 = tpu.matmul %42, %43, %cst_16 {dimension_numbers = #tpu.dot_dimension_numbers<[1], [0], [0], [1], [0, 0, 1, 1], [], []>} : vector<2x32xbf16>, vector<32x128xbf16>, vector<2x128xf32> -> vector<2x128xf32>
    %45 = arith.addf %41, %44 : vector<2x128xf32>
    %46 = vector.extract_strided_slice %45 {offsets = [0, 0], sizes = [2, 32], strides = [1, 1]} : vector<2x128xf32> to vector<2x32xf32>
    %47 = arith.negf %46 : vector<2x32xf32>
    %48 = math.exp %47 : vector<2x32xf32>
    %cst_17 = arith.constant 1.000000e+00 : f32
    %49 = vector.broadcast %cst_17 : f32 to vector<2x32xf32>
    %50 = arith.addf %49, %48 : vector<2x32xf32>
    %51 = arith.divf %49, %50 : vector<2x32xf32>
    %52 = vector.extract_strided_slice %45 {offsets = [0, 32], sizes = [2, 32], strides = [1, 1]} : vector<2x128xf32> to vector<2x32xf32>
    %53 = arith.negf %52 : vector<2x32xf32>
    %54 = math.exp %53 : vector<2x32xf32>
    %cst_18 = arith.constant 1.000000e+00 : f32
    %55 = vector.broadcast %cst_18 : f32 to vector<2x32xf32>
    %56 = arith.addf %55, %54 : vector<2x32xf32>
    %57 = arith.divf %55, %56 : vector<2x32xf32>
    %58 = vector.extract_strided_slice %45 {offsets = [0, 64], sizes = [2, 32], strides = [1, 1]} : vector<2x128xf32> to vector<2x32xf32>
    %59 = math.tanh %58 : vector<2x32xf32>
    %60 = vector.extract_strided_slice %45 {offsets = [0, 96], sizes = [2, 32], strides = [1, 1]} : vector<2x128xf32> to vector<2x32xf32>
    %61 = arith.negf %60 : vector<2x32xf32>
    %62 = math.exp %61 : vector<2x32xf32>
    %cst_19 = arith.constant 1.000000e+00 : f32
    %63 = vector.broadcast %cst_19 : f32 to vector<2x32xf32>
    %64 = arith.addf %63, %62 : vector<2x32xf32>
    %65 = arith.divf %63, %64 : vector<2x32xf32>
    %66 = arith.mulf %57, %35 : vector<2x32xf32>
    %67 = arith.mulf %51, %59 : vector<2x32xf32>
    %68 = arith.addf %66, %67 : vector<2x32xf32>
    %69 = math.tanh %68 : vector<2x32xf32>
    %70 = arith.mulf %65, %69 : vector<2x32xf32>
    %c2_i32 = arith.constant 2 : i32
    %71 = arith.index_cast %c2_i32 : i32 to index
    %c0_20 = arith.constant 0 : index
    %c0_21 = arith.constant 0 : index
    %72 = vector.load %arg1[%71, %c0_20, %c0_21] : memref<4x2x128xbf16, #tpu.memory_space<vmem>>, vector<1x2x128xbf16>
    %73 = vector.shape_cast %72 : vector<1x2x128xbf16> to vector<2x128xbf16>
    %74 = arith.extf %73 : vector<2x128xbf16> to vector<2x128xf32>
    %75 = arith.truncf %70 : vector<2x32xf32> to vector<2x32xbf16>
    %c0_22 = arith.constant 0 : index
    %c0_23 = arith.constant 0 : index
    %76 = vector.load %arg2[%c0_22, %c0_23] : memref<32x128xbf16, #tpu.memory_space<vmem>>, vector<32x128xbf16>
    %cst_24 = arith.constant dense<0.000000e+00> : vector<2x128xf32>
    %77 = tpu.matmul %75, %76, %cst_24 {dimension_numbers = #tpu.dot_dimension_numbers<[1], [0], [0], [1], [0, 0, 1, 1], [], []>} : vector<2x32xbf16>, vector<32x128xbf16>, vector<2x128xf32> -> vector<2x128xf32>
    %78 = arith.addf %74, %77 : vector<2x128xf32>
    %79 = vector.extract_strided_slice %78 {offsets = [0, 0], sizes = [2, 32], strides = [1, 1]} : vector<2x128xf32> to vector<2x32xf32>
    %80 = arith.negf %79 : vector<2x32xf32>
    %81 = math.exp %80 : vector<2x32xf32>
    %cst_25 = arith.constant 1.000000e+00 : f32
    %82 = vector.broadcast %cst_25 : f32 to vector<2x32xf32>
    %83 = arith.addf %82, %81 : vector<2x32xf32>
    %84 = arith.divf %82, %83 : vector<2x32xf32>
    %85 = vector.extract_strided_slice %78 {offsets = [0, 32], sizes = [2, 32], strides = [1, 1]} : vector<2x128xf32> to vector<2x32xf32>
    %86 = arith.negf %85 : vector<2x32xf32>
    %87 = math.exp %86 : vector<2x32xf32>
    %cst_26 = arith.constant 1.000000e+00 : f32
    %88 = vector.broadcast %cst_26 : f32 to vector<2x32xf32>
    %89 = arith.addf %88, %87 : vector<2x32xf32>
    %90 = arith.divf %88, %89 : vector<2x32xf32>
    %91 = vector.extract_strided_slice %78 {offsets = [0, 64], sizes = [2, 32], strides = [1, 1]} : vector<2x128xf32> to vector<2x32xf32>
    %92 = math.tanh %91 : vector<2x32xf32>
    %93 = vector.extract_strided_slice %78 {offsets = [0, 96], sizes = [2, 32], strides = [1, 1]} : vector<2x128xf32> to vector<2x32xf32>
    %94 = arith.negf %93 : vector<2x32xf32>
    %95 = math.exp %94 : vector<2x32xf32>
    %cst_27 = arith.constant 1.000000e+00 : f32
    %96 = vector.broadcast %cst_27 : f32 to vector<2x32xf32>
    %97 = arith.addf %96, %95 : vector<2x32xf32>
    %98 = arith.divf %96, %97 : vector<2x32xf32>
    %99 = arith.mulf %90, %68 : vector<2x32xf32>
    %100 = arith.mulf %84, %92 : vector<2x32xf32>
    %101 = arith.addf %99, %100 : vector<2x32xf32>
    %102 = math.tanh %101 : vector<2x32xf32>
    %103 = arith.mulf %98, %102 : vector<2x32xf32>
    %c3_i32 = arith.constant 3 : i32
    %104 = arith.index_cast %c3_i32 : i32 to index
    %c0_28 = arith.constant 0 : index
    %c0_29 = arith.constant 0 : index
    %105 = vector.load %arg1[%104, %c0_28, %c0_29] : memref<4x2x128xbf16, #tpu.memory_space<vmem>>, vector<1x2x128xbf16>
    %106 = vector.shape_cast %105 : vector<1x2x128xbf16> to vector<2x128xbf16>
    %107 = arith.extf %106 : vector<2x128xbf16> to vector<2x128xf32>
    %108 = arith.truncf %103 : vector<2x32xf32> to vector<2x32xbf16>
    %c0_30 = arith.constant 0 : index
    %c0_31 = arith.constant 0 : index
    %109 = vector.load %arg2[%c0_30, %c0_31] : memref<32x128xbf16, #tpu.memory_space<vmem>>, vector<32x128xbf16>
    %cst_32 = arith.constant dense<0.000000e+00> : vector<2x128xf32>
    %110 = tpu.matmul %108, %109, %cst_32 {dimension_numbers = #tpu.dot_dimension_numbers<[1], [0], [0], [1], [0, 0, 1, 1], [], []>} : vector<2x32xbf16>, vector<32x128xbf16>, vector<2x128xf32> -> vector<2x128xf32>
    %111 = arith.addf %107, %110 : vector<2x128xf32>
    %112 = vector.extract_strided_slice %111 {offsets = [0, 0], sizes = [2, 32], strides = [1, 1]} : vector<2x128xf32> to vector<2x32xf32>
    %113 = arith.negf %112 : vector<2x32xf32>
    %114 = math.exp %113 : vector<2x32xf32>
    %cst_33 = arith.constant 1.000000e+00 : f32
    %115 = vector.broadcast %cst_33 : f32 to vector<2x32xf32>
    %116 = arith.addf %115, %114 : vector<2x32xf32>
    %117 = arith.divf %115, %116 : vector<2x32xf32>
    %118 = vector.extract_strided_slice %111 {offsets = [0, 32], sizes = [2, 32], strides = [1, 1]} : vector<2x128xf32> to vector<2x32xf32>
    %119 = arith.negf %118 : vector<2x32xf32>
    %120 = math.exp %119 : vector<2x32xf32>
    %cst_34 = arith.constant 1.000000e+00 : f32
    %121 = vector.broadcast %cst_34 : f32 to vector<2x32xf32>
    %122 = arith.addf %121, %120 : vector<2x32xf32>
    %123 = arith.divf %121, %122 : vector<2x32xf32>
    %124 = vector.extract_strided_slice %111 {offsets = [0, 64], sizes = [2, 32], strides = [1, 1]} : vector<2x128xf32> to vector<2x32xf32>
    %125 = math.tanh %124 : vector<2x32xf32>
    %126 = vector.extract_strided_slice %111 {offsets = [0, 96], sizes = [2, 32], strides = [1, 1]} : vector<2x128xf32> to vector<2x32xf32>
    %127 = arith.negf %126 : vector<2x32xf32>
    %128 = math.exp %127 : vector<2x32xf32>
    %cst_35 = arith.constant 1.000000e+00 : f32
    %129 = vector.broadcast %cst_35 : f32 to vector<2x32xf32>
    %130 = arith.addf %129, %128 : vector<2x32xf32>
    %131 = arith.divf %129, %130 : vector<2x32xf32>
    %132 = arith.mulf %123, %101 : vector<2x32xf32>
    %133 = arith.mulf %117, %125 : vector<2x32xf32>
    %134 = arith.addf %132, %133 : vector<2x32xf32>
    %135 = math.tanh %134 : vector<2x32xf32>
    %136 = arith.mulf %131, %135 : vector<2x32xf32>
    %c4_i32 = arith.constant 4 : i32
    %c0_36 = arith.constant 0 : index
    %c0_37 = arith.constant 0 : index
    %137 = vector.load %arg4[%c0_36, %c0_37] : memref<2x32xf32, #tpu.memory_space<vmem>>, vector<2x32xf32>
    tpu.vector_store %arg4[%c0_36, %c0_37], %136 {strides = array<i32>} : memref<2x32xf32, #tpu.memory_space<vmem>>, vector<2x32xf32>,
    %c0_38 = arith.constant 0 : index
    %c0_39 = arith.constant 0 : index
    %138 = vector.load %arg5[%c0_38, %c0_39] : memref<2x32xf32, #tpu.memory_space<vmem>>, vector<2x32xf32>
    tpu.vector_store %arg5[%c0_38, %c0_39], %134 {strides = array<i32>} : memref<2x32xf32, #tpu.memory_space<vmem>>, vector<2x32xf32>,
    %c1_i32_40 = arith.constant 1 : i32
    %139 = arith.cmpi eq, %arg0, %c1_i32_40 : i32
    %140 = arith.extui %139 : i1 to i32
    %c0_i32_41 = arith.constant 0 : i32
    %141 = arith.cmpi ne, %140, %c0_i32_41 : i32
    scf.if %141 {
      %c0_42 = arith.constant 0 : index
      %c0_43 = arith.constant 0 : index
      %142 = vector.load %arg4[%c0_42, %c0_43] : memref<2x32xf32, #tpu.memory_space<vmem>>, vector<2x32xf32>
      %c0_44 = arith.constant 0 : index
      %c0_45 = arith.constant 0 : index
      %143 = vector.load %arg3[%c0_44, %c0_45] : memref<2x32xf32, #tpu.memory_space<vmem>>, vector<2x32xf32>
      tpu.vector_store %arg3[%c0_44, %c0_45], %142 {strides = array<i32>} : memref<2x32xf32, #tpu.memory_space<vmem>>, vector<2x32xf32>,
    } else {
    }
    return
  }
  func.func @transform_0(%arg0: i32) -> (i32, i32, i32) {
    %c0_i32 = arith.constant 0 : i32
    %c0_i32_0 = arith.constant 0 : i32
    %c0_i32_1 = arith.constant 0 : i32
    return %arg0, %c0_i32, %c0_i32_0 : i32, i32, i32
  }
  func.func @transform_1(%arg0: i32) -> (i32, i32) {
    %c0_i32 = arith.constant 0 : i32
    %c0_i32_0 = arith.constant 0 : i32
    %c0_i32_1 = arith.constant 0 : i32
    return %c0_i32, %c0_i32_0 : i32, i32
  }
  func.func @transform_2(%arg0: i32) -> (i32, i32) {
    %c0_i32 = arith.constant 0 : i32
    %c0_i32_0 = arith.constant 0 : i32
    %c0_i32_1 = arith.constant 0 : i32
    return %c0_i32, %c0_i32_0 : i32, i32
  }
}

</mosaic_0001>

<bundles_post_ra>
// kernel: vanilla_lstm_forward.1
= control target key start
LH: loop header
LB: loop body
LE: loop exit
PB: predicated region body
PF: predicated region fallthrough
CT: control target
= control target key end

     0   :  { %s664_s9 = smov 0   ;;  %s723_s0 = inlined_call_operand.vmem [shape: bf16[8,2,128], index: 0, kind: input, shape index: {}]   ;;  %s724_s1 = inlined_call_operand.vmem [shape: bf16[32,128], index: 1, kind: input, shape index: {}]   ;;  %s725_s2 = inlined_call_operand.vmem [shape: f32[2,32], index: 2, kind: output, shape index: {}]  }
   0x1 LB: > { %s670_s10 = sadd.s32 4294967295, %s640_s9   ;;  %p521_p0 = scmp.ge.s32.totalorder %s640_s9, 1  ;;  %s640_s9 = sphi %s664_s9, %s12_s9  }
   0x2   : > { %p107_p1 = scmp.lt.s32.totalorder %s640_s9, 3 }
   0x4   : > { %p108_p2 = pnand %p521_p0, %p107_p1 }
   0x5   : > { %s522_s11 = sshll.u32 (!%p108_p2), %s670_s10, 2  ;;  %p523_p4 = scmp.ne.s32.totalorder (!%p108_p2), %s670_s10, 0 }
   0x6   : > { %111 = sbr.rel (%p108_p2) target bundleno = 2800 (0xaf0), region = 28  ;;  %p124_p3 = scmp.lt.s32.totalorder (!%p108_p2), %s522_s11, 7 }
   0xb   : > { %s727_s11 = smov (!%p124_p3, %s522_s11), 7  ;;  %132 = sbr.rel (%p523_p4) target bundleno = 18 (0x12), region = 32 }
   0xc   : > { %s678_s14 = scalar_lea.vmem %s723_s0, %s727_s11 }
  0x10   : > { %vm133_vm0 = vcmask 254976   ;;  %v642_v0 = vmov 0.0  }
  0x11   : > { %134 = vst.msk [vmem:[#allocation2] sm:$0x3] %vm133_vm0, %v642_v0  ;;  %135 = vst.msk [vmem:[#allocation3] sm:$0x3] %vm133_vm0, %v642_v0 }
  0x12 PF: > { %v600_v1 = vld [vmem:[%s724_s1 + $0x8] sm:$0xff]   ;;  %v643_v2 = vmov 0.0   ;;  %v601_v3 = vld [vmem:[%s724_s1] sm:$0xff]   ;;  %vm644_vm1 = vmmov 0   ;;  %vm157_vm2 = vcmask 261120   ;;  %s645_s19 = smov 64  }
  0x13   : > { %553 = vmatprep.subr.bf16.mxu0 %v643_v2  ;;  %561 = vmatprep.subr.bf16.mxu1 %v643_v2  ;;  %v138_v6 = vld [vmem:[%s678_s14] sm:$0x1]  ;;  %s646_s20 = smov 32   ;;  %v529_v30 = vld [vmem:[%s678_s14 + $0x1] sm:$0x1]  ;;  %s648_s21 = smov 96  }
  0x14   : > { %554 = vmatpush3.bf16.msra.mxu0 %v600_v1  ;;  %557 = vmatprep.mubr.msk.bf16.mxu0 %vm644_vm1, %v643_v2  ;;  %v139_v7 = vunpack.c.l.bf16 %v138_v6  ;;  %v239_v31 = vunpack.c.l.bf16 %v529_v30  ;;  %v532_v52 = vld [vmem:[%s678_s14 + $0x2] sm:$0x1]  ;;  %vm473_vm3 = vcmask 254976   ;;  %p538_p5 = scmp.ne.s32.totalorder %s670_s10, 1 }
  0x15   : > { %555 = vmatprep.subr.bf16.mxu0 %v643_v2  ;;  %562 = vmatpush3.bf16.msra.mxu1 %v600_v1  ;;  %v314_v53 = vunpack.c.l.bf16 %v532_v52 }
  0x16   : > { %563 = vmatprep.subr.bf16.mxu1 %v643_v2  ;;  %565 = vmatprep.mubr.msk.bf16.mxu1 %vm644_vm1, %v643_v2 }
  0x18   : > { %v136_v4 = vld [vmem:[#allocation2] sm:$0x3]  ;;  %556 = vmatpush3.bf16.msra.mxu0 %v601_v3  ;;  %v528_v14 = vld.sshfl [vmem:[#allocation3] sm:$0x3 pattern:$0x76325410] }
  0x19   : > { %v140_v5 = vpack.c.bf16 %v136_v4, %v136_v4  ;;  %564 = vmatpush3.bf16.msra.mxu1 %v601_v3  ;;  %569 = vmatprep.subr.bf16.mxu0 %v643_v2 }
  0x1a   : > { %577 = vmatprep.subr.bf16.mxu1 %v643_v2 }
  0x1b   : > { %558 = vmatmul.mubr.msk.bf16.vlgmr.msra.gmra.mxu0 %vm157_vm2, %v140_v5 }
  0x1c   : > { %570 = vmatpush3.bf16.msra.mxu0 %v600_v1  ;;  %573 = vmatprep.mubr.msk.bf16.mxu0 %vm644_vm1, %v643_v2 }
  0x1d   : > { %571 = vmatprep.subr.bf16.mxu0 %v643_v2 }
  0x20   : > { %572 = vmatpush3.bf16.msra.mxu0 %v601_v3 }
  0xdb   : > { %v195_v8 = vpop.f32.mrf.mxu0 }
  0xdc   : > { %v201_v9 = vadd.f32 %v195_v8, %v139_v7 }
  0xdd   : > { %v559_v10 = vpop.f32.mrf.mxu0 }
  0xde   : > { %602 = vtanh.f32 %v201_v9  ;;  %v527_v15 = vmul.f32 -1.442695, %v201_v9  ;;  %v535_v10 = vld [vmem:[%s678_s14 + $0x3] sm:$0x1] }
  0xdf   : > { %v198_v11 = vpop.f32.mrf.mxu0 }
  0xe0   : > { %604 = vpow2.f32 %v527_v15  ;;  %v389_v11 = vunpack.c.l.bf16 %v535_v10 }
  0xe1   : > { %v560_v12 = vpop.f32.mrf.mxu0 }
  0xeb   : > { %v603_v13 = vpop.eup %602 }
  0xec   : > { %222 = vrot.lane.b32.xlu0 %v603_v13, %s645_s19 }
  0xed   : > { %v605_v16 = vpop.eup %604 }
  0xee   : > { %v205_v17 = vadd.f32 1.0, %v605_v16 }
  0xf0   : > { %217 = vrot.lane.b32.xlu0 %v528_v14, %s646_s20  ;;  %606 = vrcp.f32 %v205_v17 }
  0xfd   : > { %v607_v18 = vpop.eup %606 }
 0x15e   : > { %v223_v19 = vpop.permute.xlu0 %222 }
 0x15f   : > { %v225_v20 = vmul.f32 %v607_v18, %v223_v19 }
 0x161   : > { %227 = vrot.lane.b32.xlu1 %v225_v20, %s646_s20 }
 0x162   : > { %v218_v21 = vpop.permute.xlu0 %217 }
 0x163   : > { %v220_v22 = vmul.f32 %v607_v18, %v218_v21 }
 0x1d3   : > { %v228_v23 = vpop.permute.xlu1 %227 }
 0x1d4   : > { %v230_v24 = vadd.f32 %v228_v23, %v220_v22 }
 0x1d6   : > { %608 = vtanh.f32 %v230_v24 }
 0x1e3   : > { %v609_v25 = vpop.eup %608 }
 0x1e4   : > { %233 = vrot.lane.b32.xlu1 %v609_v25, %s645_s19 }
 0x256   : > { %v234_v26 = vpop.permute.xlu1 %233 }
 0x257   : > { %v236_v27 = vmul.f32 %v607_v18, %v234_v26 }
 0x259   : > { %v240_v28 = vpack.c.bf16 %v236_v27, %v236_v27  ;;  %v647_v27 = vmov 1983009808  }
 0x25b   : > { %242 = vrot.lane.b32.xlu0 %v240_v28, %s646_s20  ;;  %v464_v28 = vunpack.c.l.s4 %v647_v27 }
 0x25d   : > { %v465_v30 = vunpack.c.0.s8 %v464_v28 }
 0x2cd   : > { %v243_v29 = vpop.permute.xlu0 %242 }
 0x2ce   : > { %566 = vmatmul.mubr.msk.bf16.vlgmr.msra.gmra.mxu1 %vm157_vm2, %v243_v29  ;;  %v466_v29 = vlaneseq }
 0x2cf   : > { %578 = vmatpush3.bf16.msra.mxu1 %v600_v1  ;;  %581 = vmatprep.mubr.msk.bf16.mxu1 %vm644_vm1, %v643_v2 }
 0x2d0   : > { %579 = vmatprep.subr.bf16.mxu1 %v643_v2 }
 0x2d3   : > { %580 = vmatpush3.bf16.msra.mxu1 %v601_v3 }
 0x38e   : > { %v281_v32 = vpop.f32.mrf.mxu1 }
 0x38f   : > { %v287_v33 = vadd.f32 %v281_v32, %v239_v31  ;;  %v467_v31 = vshrl.u32 %v466_v29, 7 }
 0x390   : > { %v567_v34 = vpop.f32.mrf.mxu1 }
 0x391   : > { %610 = vtanh.f32 %v287_v33  ;;  %v531_v38 = vmul.f32 -1.442695, %v287_v33  ;;  %v468_v32 = vsub.s32 %v465_v30, %v467_v31 }
 0x392   : > { %v284_v35 = vpop.f32.mrf.mxu1 }
 0x393   : > { %612 = vpow2.f32 %v531_v38 }
 0x394   : > { %v568_v36 = vpop.f32.mrf.mxu1 }
 0x39e   : > { %v611_v37 = vpop.eup %610 }
 0x39f   : > { %297 = vrot.lane.b32.xlu1 %v611_v37, %s645_s19 }
 0x3a0   : > { %v613_v39 = vpop.eup %612 }
 0x3a1   : > { %v291_v40 = vadd.f32 1.0, %v613_v39 }
 0x3a3   : > { %614 = vrcp.f32 %v291_v40 }
 0x3b0   : > { %v615_v41 = vpop.eup %614 }
 0x3b1   : > { %v295_v44 = vmul.f32 %v615_v41, %v230_v24 }
 0x411   : > { %v298_v42 = vpop.permute.xlu1 %297 }
 0x412   : > { %v300_v43 = vmul.f32 %v615_v41, %v298_v42 }
 0x414   : > { %302 = vrot.lane.b32.xlu0 %v300_v43, %s646_s20 }
 0x486   : > { %v303_v45 = vpop.permute.xlu0 %302 }
 0x487   : > { %v305_v46 = vadd.f32 %v303_v45, %v295_v44 }
 0x489   : > { %616 = vtanh.f32 %v305_v46 }
 0x496   : > { %v617_v47 = vpop.eup %616 }
 0x497   : > { %308 = vrot.lane.b32.xlu1 %v617_v47, %s645_s19 }
 0x509   : > { %v309_v48 = vpop.permute.xlu1 %308 }
 0x50a   : > { %v311_v49 = vmul.f32 %v615_v41, %v309_v48 }
 0x50c   : > { %v315_v50 = vpack.c.bf16 %v311_v49, %v311_v49 }
 0x50e   : > { %317 = vrot.lane.b32.xlu0 %v315_v50, %s646_s20 }
 0x580   : > { %v318_v51 = vpop.permute.xlu0 %317 }
 0x581   : > { %574 = vmatmul.mubr.msk.bf16.vlgmr.msra.gmra.mxu0 %vm157_vm2, %v318_v51 }
 0x641   : > { %v356_v54 = vpop.f32.mrf.mxu0 }
 0x642   : > { %v362_v55 = vadd.f32 %v356_v54, %v314_v53 }
 0x643   : > { %v575_v56 = vpop.f32.mrf.mxu0 }
 0x644   : > { %618 = vtanh.f32 %v362_v55  ;;  %v534_v60 = vmul.f32 -1.442695, %v362_v55 }
 0x645   : > { %v359_v57 = vpop.f32.mrf.mxu0 }
 0x646   : > { %620 = vpow2.f32 %v534_v60 }
 0x647   : > { %v576_v58 = vpop.f32.mrf.mxu0 }
 0x651   : > { %v619_v59 = vpop.eup %618 }
 0x652   : > { %372 = vrot.lane.b32.xlu1 %v619_v59, %s645_s19 }
 0x653   : > { %v621_v61 = vpop.eup %620 }
 0x654   : > { %v366_v62 = vadd.f32 1.0, %v621_v61 }
 0x656   : > { %622 = vrcp.f32 %v366_v62 }
 0x663   : > { %v623_v63 = vpop.eup %622 }
 0x664   : > { %v370_v2 = vmul.f32 %v623_v63, %v305_v46 }
 0x6c4   : > { %v373_v0 = vpop.permute.xlu1 %372 }
 0x6c5   : > { %v375_v1 = vmul.f32 %v623_v63, %v373_v0 }
 0x6c7   : > { %377 = vrot.lane.b32.xlu0 %v375_v1, %s646_s20 }
 0x739   : > { %v378_v3 = vpop.permute.xlu0 %377 }
 0x73a   : > { %v380_v4 = vadd.f32 %v378_v3, %v370_v2 }
 0x73c   : > { %624 = vtanh.f32 %v380_v4 }
 0x749   : > { %v625_v5 = vpop.eup %624 }
 0x74a   : > { %383 = vrot.lane.b32.xlu1 %v625_v5, %s645_s19 }
 0x7bc   : > { %v384_v6 = vpop.permute.xlu1 %383 }
 0x7bd   : > { %v386_v7 = vmul.f32 %v623_v63, %v384_v6 }
 0x7bf   : > { %v390_v8 = vpack.c.bf16 %v386_v7, %v386_v7 }
 0x7c1   : > { %392 = vrot.lane.b32.xlu0 %v390_v8, %s646_s20 }
 0x833   : > { %v393_v9 = vpop.permute.xlu0 %392 }
 0x834   : > { %582 = vmatmul.mubr.msk.bf16.vlgmr.msra.gmra.mxu1 %vm157_vm2, %v393_v9 }
 0x8f4   : > { %v431_v12 = vpop.f32.mrf.mxu1 }
 0x8f5   : > { %v437_v13 = vadd.f32 %v431_v12, %v389_v11 }
 0x8f6   : > { %v583_v14 = vpop.f32.mrf.mxu1 }
 0x8f7   : > { %626 = vtanh.f32 %v437_v13  ;;  %v537_v18 = vmul.f32 -1.442695, %v437_v13 }
 0x8f8   : > { %v434_v15 = vpop.f32.mrf.mxu1 }
 0x8f9   : > { %628 = vpow2.f32 %v537_v18 }
 0x8fa   : > { %v584_v16 = vpop.f32.mrf.mxu1 }
 0x904   : > { %v627_v17 = vpop.eup %626 }
 0x905   : > { %447 = vrot.lane.b32.xlu1 %v627_v17, %s645_s19 }
 0x906   : > { %v629_v19 = vpop.eup %628 }
 0x907   : > { %v441_v20 = vadd.f32 1.0, %v629_v19 }
 0x909   : > { %630 = vrcp.f32 %v441_v20 }
 0x916   : > { %v631_v21 = vpop.eup %630 }
 0x917   : > { %v445_v24 = vmul.f32 %v631_v21, %v380_v4 }
 0x977   : > { %v448_v22 = vpop.permute.xlu1 %447 }
 0x978   : > { %v450_v23 = vmul.f32 %v631_v21, %v448_v22 }
 0x97a   : > { %452 = vrot.lane.b32.xlu0 %v450_v23, %s646_s20 }
 0x9ec   : > { %v453_v25 = vpop.permute.xlu0 %452 }
 0x9ed   : > { %v455_v26 = vadd.f32 %v453_v25, %v445_v24 }
 0x9ef   : > { %632 = vtanh.f32 %v455_v26  ;;  %v482_v34 = vrot.slane %v455_v26, %v468_v32 }
 0x9fc   : > { %v633_v33 = vpop.eup %632 }
 0x9fd   : > { %458 = vrot.lane.b32.xlu1 %v633_v33, %s645_s19 }
 0xa01   : > { %483 = vrot.lane.b32.xlu1 %v482_v34, %s648_s21 }
 0xa6f   : > { %v459_v35 = vpop.permute.xlu1 %458 }
 0xa70   : > { %v461_v36 = vmul.f32 %v631_v21, %v459_v35 }
 0xa72   : > { %v469_v37 = vrot.slane %v461_v36, %v468_v32 }
 0xa73   : > { %v484_v38 = vpop.permute.xlu1 %483 }
 0xa74   : > { %486 = vst.msk [vmem:[#allocation3] sm:$0x3] %vm473_vm3, %v484_v38  ;;  %470 = vrot.lane.b32.xlu0 %v469_v37, %s646_s20 }
 0xae3   : > { %490 = sbr.rel (%p538_p5) target bundleno = 2800 (0xaf0), region = 36 }
 0xae6   : > { %v471_v39 = vpop.permute.xlu0 %470 }
 0xae7   : > { %474 = vst.msk [vmem:[#allocation2] sm:$0x3] %vm473_vm3, %v471_v39 }
 0xaee   : > { %v491_v40 = vld [vmem:[#allocation2] sm:$0x3] }
 0xaef   : > { %492 = vst.msk [vmem:[%s725_s2] sm:$0x3] %vm473_vm3, %v491_v40 }
 0xaf0 PF: > { %s12_s9 = sadd.s32 1, %s640_s9  }
 0xaf1   : > { %p9_p6 = scmp.ge.s32.totalorder %s12_s9, 4  }
 0xaf3   :  { %11 = sbr.rel (!%p9_p6) target bundleno = 1 (0x1), region = 65 }

</bundles_post_ra>
